<compile_context>
chip_gen: v6e
topology: v6e:2x2x1
jax: 0.10.0
libtpu: 0.0.40
codegen_flags: <defaults>
</compile_context>

<pallas_src>
import functools

import jax
import jax.numpy as jnp
from jax import lax
from jax.experimental import pallas as pl
from jax.experimental.pallas import tpu as pltpu

_SUBLANES = 8
_LANES = 128
# Conservative count of live full-tile f32/i32 temps per element (f32 cast, z, e,
# log_prob/latent, class iota, target mask) used for VMEM planning.
_F32_TEMPS = 6


def _ceil_div(a, b):
    return -(-a // b)


# --------------------------- in-kernel helpers ----------------------------------
def _pack_partials(part_ref, *sums):
    """Scatter scalar partial sums into lanes 0..k-1 of sublane 0 of the (1,8,128) block."""
    sub = lax.broadcasted_iota(jnp.int32, (1, _SUBLANES, _LANES), 1)
    lane = lax.broadcasted_iota(jnp.int32, (1, _SUBLANES, _LANES), 2)
    acc = jnp.zeros((1, _SUBLANES, _LANES), jnp.float32)
    for k, s in enumerate(sums):
        acc = acc + jnp.where((sub == 0) & (lane == k), s, 0.0)
    part_ref[...] = acc


def _batch_mask(total_rows, class_axis, block_shape):
    """Boolean mask (size-1 class axis) of in-range batch entries of this tile."""
    batch_axis = 1 - class_axis
    tb = block_shape[batch_axis]
    shp = [1, 1]
    shp[batch_axis] = tb
    idx = lax.broadcasted_iota(jnp.int32, tuple(shp), batch_axis)
    return (pl.program_id(0) * tb + idx) < total_rows


# ------------------------------- kernels -----------------------------------------
def _train_kernel(total_rows, class_axis, logits_ref, tgt_ref, part_ref):
    logits = logits_ref[...].astype(jnp.float32)      # native-dtype ingress, 1 cast
    tgt = tgt_ref[...]                                # int32, size-1 class axis
    valid = _batch_mask(total_rows, class_axis, logits.shape)

    cls = lax.broadcasted_iota(jnp.int32, logits.shape, class_axis)
    is_tgt = cls == tgt                               # no f32 one-hot materialized

    m = jnp.max(logits, axis=class_axis, keepdims=True)
    z = logits - m
    e = jnp.exp(z)                                    # the only full-tile EUP pass
    s = jnp.sum(e, axis=class_axis, keepdims=True)
    log_s = jnp.log(s)

    # Target value extracted once from z; everything else derived per-row (no extra
    # full-tile selects / reductions over log_prob and e).
    z_tgt = jnp.sum(jnp.where(is_tgt, z, 0.0), axis=class_axis, keepdims=True)
    ce_rows = jnp.where(valid, log_s - z_tgt, 0.0)    # -log_prob[target]

    # latent = relu(0.2 - prob / prob[target]) == relu(0.2 - e * exp(-z_tgt))
    latent = jnp.maximum(0.2 - e * jnp.exp(-z_tgt), 0.0)
    log_prob = z - log_s
    one_rows = jnp.where(
        valid, -jnp.sum(log_prob * latent, axis=class_axis, keepdims=True), 0.0)

    _pack_partials(part_ref, jnp.sum(ce_rows), jnp.sum(one_rows))


def _warmup_kernel(total_rows, class_axis, logits_ref, tgt_ref, part_ref):
    logits = logits_ref[...].astype(jnp.float32)
    tgt = tgt_ref[...]
    valid = _batch_mask(total_rows, class_axis, logits.shape)
    num_classes = logits.shape[class_axis]

    cls = lax.broadcasted_iota(jnp.int32, logits.shape, class_axis)
    is_tgt = cls == tgt

    m = jnp.max(logits, axis=class_axis, keepdims=True)
    z = logits - m                                    # per-row max(z) == 0 exactly
    e = jnp.exp(z)
    s = jnp.sum(e, axis=class_axis, keepdims=True)
    log_s = jnp.log(s)

    z_tgt = jnp.sum(jnp.where(is_tgt, z, 0.0), axis=class_axis, keepdims=True)
    ce_rows = jnp.where(valid, log_s - z_tgt, 0.0)    # -log_prob[target]

    # top-2 directly on z: top-1 positions are exactly z == 0 (first-occurrence
    # tie-break via min class index); z2 is the second-best shifted logit.
    top1 = jnp.min(jnp.where(z == 0.0, cls, num_classes),
                   axis=class_axis, keepdims=True)
    z2 = jnp.max(jnp.where(cls == top1, -jnp.inf, z),
                 axis=class_axis, keepdims=True)

    # CE against the 2nd-best label is log(s) - z2; lam = relu(0.2 - p2/p1) with
    # p2/p1 = exp(z2 - 0): exp only on the per-row scalar.
    ce_lat_rows = jnp.where(valid, log_s - z2, 0.0)
    lam_rows = jnp.where(valid, jnp.maximum(0.2 - jnp.exp(z2), 0.0), 0.0)

    _pack_partials(part_ref, jnp.sum(ce_rows), jnp.sum(ce_lat_rows),
                   jnp.sum(lam_rows))


# --------------------------- VMEM / tiling planning -------------------------------
def _vmem_budget():
    """Returns (planning_budget_bytes, capacity_bytes): plan against ~3/4 of VMEM."""
    cap = None
    try:
        cap = getattr(pltpu.get_tpu_info(), "vmem_capacity_bytes", None)
    except Exception:
        cap = None
    if not cap:
        cap = 64 * 1024 * 1024          # conservative fallback (v7x per-TC size)
    return (cap * 3) // 4, cap


def _pick_standard_tile(batch, classes, itemsize, budget):
    """(tile_rows, bytes_per_row) for the (B, C) layout (classes on lanes)."""
    # double-buffered native-dtype ingress + f32/i32 temps + lane-padded int32 target
    row_bytes = classes * (2 * itemsize + _F32_TEMPS * 4) + 2 * _LANES * 4
    align = max(_SUBLANES, 32 // max(1, itemsize))    # 8 f32 / 16 bf16 / 32 int8
    tb = budget // row_bytes
    if batch >= 2 * align:
        # keep >= 2 aligned tiles so the "parallel" axis feeds both v7x TensorCores
        tb = min(tb, _ceil_div(_ceil_div(batch, 2), align) * align)
    if tb >= batch or batch <= _SUBLANES:
        return batch, row_bytes                       # full-batch block: always legal
    tb = max(_SUBLANES, (tb // align) * align)        # never a <8 second-minor block
    return tb, row_bytes


def _pick_transposed_tile(batch, classes, itemsize, budget):
    """(tile_cols, bytes_per_col) for the (C, B) layout (batch on lanes)."""
    c_pad = _ceil_div(classes, _SUBLANES) * _SUBLANES
    col_bytes = c_pad * (2 * itemsize + _F32_TEMPS * 4) + 2 * _SUBLANES * 4
    tb = budget // col_bytes
    if batch >= 2 * _LANES:
        tb = min(tb, _ceil_div(_ceil_div(batch, 2), _LANES) * _LANES)
    if tb >= batch or batch <= _LANES:
        return batch, col_bytes
    tb = max(_LANES, (tb // _LANES) * _LANES)         # lane tiles: x128 or full batch
    return tb, col_bytes


# --------------------------------- wrapper ----------------------------------------
def self_filter_loss(output, target, num_classes, mode, tile_rows=None):
    """Pallas implementation of SelfFilterLoss.forward."""
    if mode == "train":
        kernel_fn = _train_kernel
    elif mode == "warm_up":
        kernel_fn = _warmup_kernel
    else:
        raise ValueError("")

    batch, classes = output.shape
    itemsize = output.dtype.itemsize
    budget, capacity = _vmem_budget()

    transposed = classes < _LANES     # small-C: classes -> sublanes, batch -> lanes
    if transposed:
        picked, unit_bytes = _pick_transposed_tile(batch, classes, itemsize, budget)
        tile_rows = picked if tile_rows is None else tile_rows
        class_axis = 0
        logits = output.T                                  # (C, B)
        tgt = target.astype(jnp.int32).reshape(1, batch)
        logits_spec = pl.BlockSpec((classes, tile_rows), lambda i: (0, i))
        tgt_spec = pl.BlockSpec((1, tile_rows), lambda i: (0, i))
    else:
        picked, unit_bytes = _pick_standard_tile(batch, classes, itemsize, budget)
        tile_rows = picked if tile_rows is None else tile_rows
        class_axis = 1
        logits = output                                    # (B, C)
        tgt = target.astype(jnp.int32).reshape(batch, 1)
        logits_spec = pl.BlockSpec((tile_rows, classes), lambda i: (i, 0))
        tgt_spec = pl.BlockSpec((tile_rows, 1), lambda i: (i, 0))

    num_tiles = _ceil_div(batch, tile_rows)
    vmem_limit = int(min(capacity,
                         max(budget, tile_rows * unit_bytes + (2 << 20))))

    kernel = functools.partial(kernel_fn, batch, class_axis)

    cost = pl.CostEstimate(
        flops=12 * batch * classes,
        transcendentals=batch * classes + 4 * batch,
        bytes_accessed=(batch * classes * itemsize + batch * 4
                        + num_tiles * _SUBLANES * _LANES * 4),
    )

    partials = pl.pallas_call(
        kernel,
        out_shape=jax.ShapeDtypeStruct((num_tiles, _SUBLANES, _LANES), jnp.float32),
        grid=(num_tiles,),
        in_specs=[logits_spec, tgt_spec],
        out_specs=pl.BlockSpec((1, _SUBLANES, _LANES), lambda i: (i, 0, 0)),
        compiler_params=pltpu.CompilerParams(
            dimension_semantics=("parallel",),   # independent batch tiles (2 TC v7x)
            vmem_limit_bytes=vmem_limit,
        ),
        cost_estimate=cost,
    )(logits, tgt)

    # Tiny cross-tile reduction + compile-time-constant scalar math in plain JAX.
    sums = jnp.sum(partials, axis=(0, 1))
    inv_b = 1.0 / batch
    loss_ce = sums[0] * inv_b
    if mode == "train":
        conf_penalty = (0.1 / (num_classes - 1)) * (sums[1] * inv_b)
    else:  # warm_up: torch broadcast (B,)*(B,1)->(B,B).mean() == mean(ce)*mean(lam)
        conf_penalty = 0.5 * (sums[1] * inv_b) * (sums[2] * inv_b)
    return loss_ce + conf_penalty


# ---------------- pure-JAX reference (mirrors the PyTorch code) ----------------
def _ref_loss(output, target, num_classes, mode):
    output = output.astype(jnp.float32)
    B, C = output.shape
    log_prob = jax.nn.log_softmax(output, axis=1)
    prob = jax.nn.softmax(output, axis=1)
    onehot = jax.nn.one_hot(target, C, dtype=jnp.float32)
    loss_ce = -jnp.sum(log_prob * onehot) / B
    if mode == "warm_up":
        vals, idx = lax.top_k(prob, 2)
        latent_label = idx[:, 1]
        lam = jnp.maximum(0.2 - vals[:, 1] / vals[:, 0], 0.0)[:, None]  # (B,1)
        ce_none = -jnp.take_along_axis(log_prob, latent_label[:, None], axis=1)[:, 0]
        # faithful torch broadcast: (B,) * (B,1) -> (B,B), then mean over all
        conf_penalty = 0.5 * jnp.mean(ce_none[None, :] * lam)
    elif mode == "train":
        p_tgt = jnp.take_along_axis(prob, target[:, None], axis=1)
        confident = 0.2 - prob / p_tgt
        latent = confident * (confident >= 0.0)
        one_loss = -jnp.sum(log_prob * latent) / B
        conf_penalty = 0.1 * one_loss / (num_classes - 1)
    else:
        raise ValueError("")
    return loss_ce + conf_penalty


if __name__ == "__main__":
    failures = []

    def check(output, target, num_classes, mode, rtol, atol, tag):
        got = jax.block_until_ready(
            self_filter_loss(output, target, num_classes, mode))
        want = jax.block_until_ready(
            _ref_loss(output.astype(jnp.float32), target, num_classes, mode))
        if not jnp.allclose(got, want, rtol=rtol, atol=atol):
            failures.append(f"MISMATCH {tag} mode={mode}: kernel={got} ref={want}")

    key = jax.random.PRNGKey(0)
    k1, k2, k3, k4 = jax.random.split(key, 4)

    # Small-C case (C < 128 -> class-on-sublane relayout), f32 and bf16 ingress.
    B, C = 8, 16
    out_f32 = jax.random.normal(k1, (B, C), dtype=jnp.float32)
    tgt = jax.random.randint(k2, (B,), 0, C, dtype=jnp.int32)
    for mode in ("train", "warm_up"):
        check(out_f32, tgt, C, mode, 1e-5, 1e-5, "small-C f32")
        check(out_f32.astype(jnp.bfloat16), tgt, C, mode, 1e-4, 1e-4, "small-C bf16")

    # Wide-C case (C >= 128 -> standard layout) with a ragged last batch tile.
    B2, C2 = 20, 256
    out_wide = jax.random.normal(k3, (B2, C2), dtype=jnp.float32)
    tgt_wide = jax.random.randint(k4, (B2,), 0, C2, dtype=jnp.int32)
    for mode in ("train", "warm_up"):
        check(out_wide, tgt_wide, C2, mode, 1e-5, 1e-5, "wide-C f32")

    if failures:
        for f in failures:
            print(f)
    else:
        print("KERNEL_OK")
</pallas_src>

<mosaic_0001>
module attributes {stable_mosaic.version = 11 : i64} {
  func.func @_train_kernel(%arg0: i32, %arg1: memref<16x8xf32, #tpu.memory_space<vmem>>, %arg2: memref<1x8xi32, #tpu.memory_space<vmem>>, %arg3: memref<1x8x128xf32, #tpu.memory_space<vmem>>) attributes {dimension_semantics = [#tpu.dimension_semantics<parallel>], iteration_bounds = array<i64: 1>, scalar_prefetch = 0 : i64, scratch_operands = 0 : i64, tpu.core_type = #tpu.core_type<tc>, window_params = [{transform_indices = @transform_0, window_bounds = array<i64: 16, 8>}, {transform_indices = @transform_1, window_bounds = array<i64: 1, 8>}, {transform_indices = @transform_2, window_bounds = array<i64: 1, 8, 128>}]} {
    %c0 = arith.constant 0 : index
    %c0_0 = arith.constant 0 : index
    %0 = vector.load %arg1[%c0, %c0_0] : memref<16x8xf32, #tpu.memory_space<vmem>>, vector<16x8xf32>
    %c0_1 = arith.constant 0 : index
    %c0_2 = arith.constant 0 : index
    %1 = vector.load %arg2[%c0_1, %c0_2] : memref<1x8xi32, #tpu.memory_space<vmem>>, vector<1x8xi32>
    %2 = tpu.iota {dimensions = array<i32: 1>} : vector<1x8xi32>
    %c8_i32 = arith.constant 8 : i32
    %3 = arith.muli %arg0, %c8_i32 : i32
    %4 = vector.broadcast %3 : i32 to vector<1x8xi32>
    %5 = arith.addi %4, %2 : vector<1x8xi32>
    %c8_i32_3 = arith.constant 8 : i32
    %6 = vector.broadcast %c8_i32_3 : i32 to vector<1x8xi32>
    %7 = arith.cmpi slt, %5, %6 : vector<1x8xi32>
    %8 = tpu.iota {dimensions = array<i32: 0>} : vector<16x8xi32>
    %9 = vector.broadcast %1 : vector<1x8xi32> to vector<16x8xi32>
    %10 = arith.cmpi eq, %8, %9 : vector<16x8xi32>
    %cst = arith.constant dense<0xFF800000> : vector<8xf32>
    %11 = vector.multi_reduction <maximumf>, %0, %cst [0] : vector<16x8xf32> to vector<8xf32>
    %12 = vector.shape_cast %11 : vector<8xf32> to vector<1x8xf32>
    %13 = vector.broadcast %12 : vector<1x8xf32> to vector<16x8xf32>
    %14 = arith.subf %0, %13 : vector<16x8xf32>
    %15 = math.exp %14 : vector<16x8xf32>
    %cst_4 = arith.constant dense<0.000000e+00> : vector<8xf32>
    %16 = vector.multi_reduction <add>, %15, %cst_4 [0] : vector<16x8xf32> to vector<8xf32>
    %17 = vector.shape_cast %16 : vector<8xf32> to vector<1x8xf32>
    %18 = math.log %17 : vector<1x8xf32>
    %cst_5 = arith.constant 0.000000e+00 : f32
    %19 = vector.broadcast %cst_5 : f32 to vector<16x8xf32>
    %20 = arith.select %10, %14, %19 : vector<16x8xi1>, vector<16x8xf32>
    %cst_6 = arith.constant dense<0.000000e+00> : vector<8xf32>
    %21 = vector.multi_reduction <add>, %20, %cst_6 [0] : vector<16x8xf32> to vector<8xf32>
    %22 = vector.shape_cast %21 : vector<8xf32> to vector<1x8xf32>
    %23 = arith.subf %18, %22 : vector<1x8xf32>
    %cst_7 = arith.constant 0.000000e+00 : f32
    %24 = vector.broadcast %cst_7 : f32 to vector<1x8xf32>
    %25 = arith.select %7, %23, %24 : vector<1x8xi1>, vector<1x8xf32>
    %cst_8 = arith.constant 0.000000e+00 : f32
    %26 = vector.broadcast %cst_8 : f32 to vector<1x8xf32>
    %27 = arith.subf %26, %22 : vector<1x8xf32>
    %28 = math.exp %27 : vector<1x8xf32>
    %29 = vector.broadcast %28 : vector<1x8xf32> to vector<16x8xf32>
    %30 = arith.mulf %15, %29 : vector<16x8xf32>
    %cst_9 = arith.constant 2.000000e-01 : f32
    %31 = vector.broadcast %cst_9 : f32 to vector<16x8xf32>
    %32 = arith.subf %31, %30 : vector<16x8xf32>
    %cst_10 = arith.constant 0.000000e+00 : f32
    %33 = vector.broadcast %cst_10 : f32 to vector<16x8xf32>
    %34 = arith.maximumf %32, %33 : vector<16x8xf32>
    %35 = vector.broadcast %18 : vector<1x8xf32> to vector<16x8xf32>
    %36 = arith.subf %14, %35 : vector<16x8xf32>
    %37 = arith.mulf %36, %34 : vector<16x8xf32>
    %cst_11 = arith.constant dense<0.000000e+00> : vector<8xf32>
    %38 = vector.multi_reduction <add>, %37, %cst_11 [0] : vector<16x8xf32> to vector<8xf32>
    %39 = vector.shape_cast %38 : vector<8xf32> to vector<1x8xf32>
    %cst_12 = arith.constant 0.000000e+00 : f32
    %40 = vector.broadcast %cst_12 : f32 to vector<1x8xf32>
    %41 = arith.subf %40, %39 : vector<1x8xf32>
    %cst_13 = arith.constant 0.000000e+00 : f32
    %42 = vector.broadcast %cst_13 : f32 to vector<1x8xf32>
    %43 = arith.select %7, %41, %42 : vector<1x8xi1>, vector<1x8xf32>
    %44 = vector.shape_cast %25 : vector<1x8xf32> to vector<1x1x8xf32>
    %cst_14 = arith.constant dense<0.000000e+00> : vector<1xf32>
    %45 = vector.multi_reduction <add>, %44, %cst_14 [1, 2] : vector<1x1x8xf32> to vector<1xf32>
    %46 = vector.shape_cast %45 : vector<1xf32> to vector<1x1x1xf32>
    %47 = vector.extract %46[0, 0, 0] : f32 from vector<1x1x1xf32>
    %48 = vector.shape_cast %43 : vector<1x8xf32> to vector<1x1x8xf32>
    %cst_15 = arith.constant dense<0.000000e+00> : vector<1xf32>
    %49 = vector.multi_reduction <add>, %48, %cst_15 [1, 2] : vector<1x1x8xf32> to vector<1xf32>
    %50 = vector.shape_cast %49 : vector<1xf32> to vector<1x1x1xf32>
    %51 = vector.extract %50[0, 0, 0] : f32 from vector<1x1x1xf32>
    %52 = tpu.iota {dimensions = array<i32: 1>} : vector<1x8x128xi32>
    %53 = tpu.iota {dimensions = array<i32: 2>} : vector<1x8x128xi32>
    %cst_16 = arith.constant 0.000000e+00 : f32
    %54 = vector.broadcast %cst_16 : f32 to vector<1x8x128xf32>
    %c0_i32 = arith.constant 0 : i32
    %55 = vector.broadcast %c0_i32 : i32 to vector<1x8x128xi32>
    %56 = arith.cmpi eq, %52, %55 : vector<1x8x128xi32>
    %c0_i32_17 = arith.constant 0 : i32
    %57 = vector.broadcast %c0_i32_17 : i32 to vector<1x8x128xi32>
    %58 = arith.cmpi eq, %53, %57 : vector<1x8x128xi32>
    %59 = arith.andi %56, %58 : vector<1x8x128xi1>
    %cst_18 = arith.constant 0.000000e+00 : f32
    %60 = vector.broadcast %47 : f32 to vector<1x8x128xf32>
    %61 = vector.broadcast %cst_18 : f32 to vector<1x8x128xf32>
    %62 = arith.select %59, %60, %61 : vector<1x8x128xi1>, vector<1x8x128xf32>
    %63 = arith.addf %54, %62 : vector<1x8x128xf32>
    %c0_i32_19 = arith.constant 0 : i32
    %64 = vector.broadcast %c0_i32_19 : i32 to vector<1x8x128xi32>
    %65 = arith.cmpi eq, %52, %64 : vector<1x8x128xi32>
    %c1_i32 = arith.constant 1 : i32
    %66 = vector.broadcast %c1_i32 : i32 to vector<1x8x128xi32>
    %67 = arith.cmpi eq, %53, %66 : vector<1x8x128xi32>
    %68 = arith.andi %65, %67 : vector<1x8x128xi1>
    %cst_20 = arith.constant 0.000000e+00 : f32
    %69 = vector.broadcast %51 : f32 to vector<1x8x128xf32>
    %70 = vector.broadcast %cst_20 : f32 to vector<1x8x128xf32>
    %71 = arith.select %68, %69, %70 : vector<1x8x128xi1>, vector<1x8x128xf32>
    %72 = arith.addf %63, %71 : vector<1x8x128xf32>
    %c0_21 = arith.constant 0 : index
    %c0_22 = arith.constant 0 : index
    %c0_23 = arith.constant 0 : index
    %73 = vector.load %arg3[%c0_21, %c0_22, %c0_23] : memref<1x8x128xf32, #tpu.memory_space<vmem>>, vector<1x8x128xf32>
    tpu.vector_store %arg3[%c0_21, %c0_22, %c0_23], %72 {strides = array<i32>} : memref<1x8x128xf32, #tpu.memory_space<vmem>>, vector<1x8x128xf32>,
    return
  }
  func.func @transform_0(%arg0: i32) -> (i32, i32) {
    %c0_i32 = arith.constant 0 : i32
    %c0_i32_0 = arith.constant 0 : i32
    return %c0_i32, %arg0 : i32, i32
  }
  func.func @transform_1(%arg0: i32) -> (i32, i32) {
    %c0_i32 = arith.constant 0 : i32
    %c0_i32_0 = arith.constant 0 : i32
    return %c0_i32, %arg0 : i32, i32
  }
  func.func @transform_2(%arg0: i32) -> (i32, i32, i32) {
    %c0_i32 = arith.constant 0 : i32
    %c0_i32_0 = arith.constant 0 : i32
    %c0_i32_1 = arith.constant 0 : i32
    return %arg0, %c0_i32, %c0_i32_0 : i32, i32, i32
  }
}

</mosaic_0001>

<bundles_post_ra>
// kernel: tpu_custom_call.1
= control target key start
LH: loop header
LB: loop body
LE: loop exit
PB: predicated region body
PF: predicated region fallthrough
CT: control target
= control target key end

     0   :  { %vm30_vm0 = vcmask 64512   ;;  %s222_s0 = inlined_call_operand.vmem [shape: f32[16,8], index: 0, kind: input, shape index: {}]   ;;  %s223_s1 = inlined_call_operand.vmem [shape: s32[1,8], index: 1, kind: input, shape index: {}]   ;;  %s224_s2 = inlined_call_operand.hbm [shape: f32[1,8,128], index: 2, kind: output, shape index: {}]  }
   0x1   :  { %v12_v0 = vld [vmem:[%s222_s0] sm:$0xff]  ;;  %v13_v1 = vld [vmem:[%s222_s0 + $0x8] sm:$0xff] }
   0x2   :  { %v31_v2 = vsel %vm30_vm0, %v12_v0, -inf  ;;  %v32_v3 = vsel %vm30_vm0, %v13_v1, -inf }
   0x3   :  { %7 = vsyncpa [#allocation3], 0  ;;  %v33_v4 = vmax.f32 %v31_v2, %v32_v3  ;;  %v15_v5 = vlaneseq  ;;  %v141_v12 = vld [vmem:[%s223_s1] ss:$0 sm:$0xff]  ;;  %vm94_vm4 = vcmask 57344   ;;  %s177_s15 = smov [#allocation2]  }
   0x4   :  { %s133_s16 = sshll.u32 %s177_s15, 4  ;;  %s134_s16 = int_to_ptr.vmem [resolvable:$true] %s133_s16 }
   0x5   :  { %v34_v6 = vrot.slane %v33_v4, 4  ;;  %v201_v8 = vshrl.u32 %v15_v5, 7  ;;  %v16_v48 = vand.u32 127, %v15_v5  ;;  %s155_s17 = scalar_lea.vmem %s134_s16, 128  ;;  %p160_p1 = scmp.lt.s32.totalorder %s134_s16, %s134_s16 }
   0x6   :  { %p156_p0 = scmp.ne.s32.totalorder %s134_s16, %s155_s17  ;;  %p161_p2 = scmp.lt.s32.totalorder %s155_s17, %s155_s17 }
   0x7   :  { %v35_v7 = vmax.f32 %v33_v4, %v34_v6  ;;  %v23_v11 = vadd.s32 8, %v201_v8  ;;  %vm28_vm1 = vcmp.eq.s32.totalorder %v201_v8, %v141_v12  ;;  %vm20_vm3 = vcmp.lt.s32.totalorder %v16_v48, 8 }
   0x8   :  { %vm115_vm5 = vcmp.eq.s32.totalorder %v201_v8, 0  ;;  %vm116_vm6 = vcmp.eq.s32.totalorder %v16_v48, 0  ;;  %vm121_vm7 = vcmp.eq.s32.totalorder %v16_v48, 1  ;;  %p162_p3 = por %p161_p2, %p160_p1 }
   0x9   :  { %v36_v9 = vrot.slane %v35_v7, 2  ;;  %vm29_vm2 = vcmp.eq.s32.totalorder %v23_v11, %v141_v12  ;;  %vm117_vm8 = vmand %vm115_vm5, %vm116_vm6 }
   0xa   :  { %vm122_vm9 = vmand %vm115_vm5, %vm121_vm7  ;;  %p163_p4 = pnand %p162_p3, %p156_p0 }
   0xb   :  { %v37_v10 = vmax.f32 %v35_v7, %v36_v9 }
   0xd   :  { %v38_v13 = vrot.slane %v37_v10, 1 }
   0xf   :  { %v39_v14 = vmax.f32 %v37_v10, %v38_v13 }
  0x11   :  { %v40_v15 = vsub.f32 %v12_v0, %v39_v14  ;;  %v41_v16 = vsub.f32 %v13_v1, %v39_v14 }
  0x13   :  { %v42_v17 = vmul.f32 1.442695, %v40_v15  ;;  %v44_v18 = vmul.f32 1.442695, %v41_v16  ;;  %v57_v19 = vsel %vm28_vm1, %v40_v15, 0.0  ;;  %v58_v20 = vsel %vm29_vm2, %v41_v16, 0.0 }
  0x14   :  { %v59_v21 = vsel %vm30_vm0, %v57_v19, 0.0  ;;  %v60_v22 = vsel %vm30_vm0, %v58_v20, 0.0 }
  0x15   :  { %147 = vpow2.f32 %v42_v17  ;;  %v61_v23 = vadd.f32 %v60_v22, %v59_v21 }
  0x16   :  { %149 = vpow2.f32 %v44_v18 }
  0x17   :  { %v62_v24 = vrot.slane %v61_v23, 4 }
  0x19   :  { %v63_v25 = vadd.f32 %v62_v24, %v61_v23 }
  0x1b   :  { %v64_v26 = vrot.slane %v63_v25, 2 }
  0x1d   :  { %v65_v27 = vadd.f32 %v64_v26, %v63_v25 }
  0x1f   :  { %v66_v28 = vrot.slane %v65_v27, 1 }
  0x21   :  { %v67_v29 = vadd.f32 %v66_v28, %v65_v27 }
  0x22   :  { %v148_v30 = vpop.eup %147 }
  0x23   :  { %v150_v31 = vpop.eup %149  ;;  %v46_v32 = vsel %vm30_vm0, %v148_v30, 0.0  ;;  %v70_v33 = vsub.f32 0.0, %v67_v29 }
  0x24   :  { %v47_v34 = vsel %vm30_vm0, %v150_v31, 0.0 }
  0x25   :  { %v48_v35 = vadd.f32 %v47_v34, %v46_v32  ;;  %v71_v36 = vmul.f32 1.442695, %v70_v33 }
  0x27   :  { %v49_v37 = vrot.slane %v48_v35, 4  ;;  %151 = vpow2.f32 %v71_v36 }
  0x29   :  { %v50_v38 = vadd.f32 %v49_v37, %v48_v35 }
  0x2b   :  { %v51_v39 = vrot.slane %v50_v38, 2 }
  0x2d   :  { %v52_v40 = vadd.f32 %v51_v39, %v50_v38 }
  0x2f   :  { %v53_v41 = vrot.slane %v52_v40, 1 }
  0x31   :  { %v54_v42 = vadd.f32 %v53_v41, %v52_v40 }
  0x33   :  { %153 = vlog2.f32 %v54_v42 }
  0x34   :  { %v152_v43 = vpop.eup %151 }
  0x35   :  { %v73_v44 = vmul.f32 %v152_v43, %v148_v30  ;;  %v74_v45 = vmul.f32 %v152_v43, %v150_v31 }
  0x37   :  { %v75_v46 = vsub.f32 0.2, %v73_v44  ;;  %v76_v47 = vsub.f32 0.2, %v74_v45 }
  0x39   :  { %v77_v51 = vmax.f32 %v75_v46, 0.0  ;;  %v78_v52 = vmax.f32 %v76_v47, 0.0 }
  0x40   :  { %v154_v49 = vpop.eup %153 }
  0x41   :  { %v56_v50 = vmul.f32 0.6931472, %v154_v49 }
  0x43   :  { %v68_v53 = vsub.f32 %v56_v50, %v67_v29  ;;  %v79_v54 = vsub.f32 %v40_v15, %v56_v50  ;;  %v80_v55 = vsub.f32 %v41_v16, %v56_v50 }
  0x45   :  { %v69_v56 = vsel %vm20_vm3, %v68_v53, 0.0  ;;  %v81_v57 = vmul.f32 %v79_v54, %v77_v51  ;;  %v82_v58 = vmul.f32 %v80_v55, %v78_v52 }
  0x46   :  { %v95_v59 = vsel %vm94_vm4, %v69_v56, 0.0 }
  0x47   :  { %96 = vadd.xlane.f32.xlu0 %v95_v59  ;;  %v83_v60 = vsel %vm30_vm0, %v81_v57, 0.0  ;;  %v84_v61 = vsel %vm30_vm0, %v82_v58, 0.0 }
  0x48   :  { %v85_v62 = vadd.f32 %v84_v61, %v83_v60 }
  0x4a   :  { %v86_v63 = vrot.slane %v85_v62, 4 }
  0x4c   :  { %v87_v0 = vadd.f32 %v86_v63, %v85_v62 }
  0x4e   :  { %v88_v1 = vrot.slane %v87_v0, 2 }
  0x50   :  { %v89_v2 = vadd.f32 %v88_v1, %v87_v0 }
  0x52   :  { %v90_v3 = vrot.slane %v89_v2, 1 }
  0x54   :  { %v91_v4 = vadd.f32 %v90_v3, %v89_v2 }
  0x56   :  { %v92_v5 = vsub.f32 0.0, %v91_v4 }
  0x58   :  { %v93_v6 = vsel %vm20_vm3, %v92_v5, 0.0 }
  0x59   :  { %v105_v7 = vsel %vm94_vm4, %v93_v6, 0.0 }
  0x5a   :  { %106 = vadd.xlane.f32.xlu0 %v105_v7 }
  0xd0   :  { %v97_v9 = vpop.xlane.xlu0 %96 }
  0xd1   :  { %v98_v10 = vrot.slane %v97_v9, 4 }
  0xd3   :  { %v99_v11 = vadd.f32 %v98_v10, %v97_v9 }
  0xd5   :  { %v100_v12 = vrot.slane %v99_v11, 2 }
  0xd7   :  { %v101_v13 = vadd.f32 %v100_v12, %v99_v11 }
  0xd9   :  { %v102_v14 = vrot.slane %v101_v13, 1 }
  0xdb   :  { %v103_v15 = vadd.f32 %v102_v14, %v101_v13 }
  0xdd   :  { %142 = vpush %v103_v15 }
  0xe3   :  { %v107_v16 = vpop.xlane.xlu0 %106 }
  0xe4   :  { %v108_v17 = vrot.slane %v107_v16, 4 }
  0xe6   :  { %v109_v18 = vadd.f32 %v108_v17, %v107_v16 }
  0xe8   :  { %v110_v19 = vrot.slane %v109_v18, 2 }
  0xea   :  { %v111_v20 = vadd.f32 %v110_v19, %v109_v18 }
  0xec   :  { %v112_v21 = vrot.slane %v111_v20, 1 }
  0xee   :  { %v113_v22 = vadd.f32 %v112_v21, %v111_v20 }
  0xf0   :  { %144 = vpush %v113_v22 }
 0x10e   :  { %s143_s0 = spop %142 }
 0x10f   :  { %v118_v23 = vstv %s143_s0 }
 0x110   :  { %v119_v25 = vsel %vm117_vm8, %v118_v23, 0.0 }
 0x121   :  { %s145_s1 = spop %144 }
 0x122   :  { %v123_v24 = vstv %s145_s1 }
 0x123   :  { %v124_v26 = vsel %vm122_vm9, %v123_v24, 0.0 }
 0x124   :  { %v125_v27 = vadd.f32 %v124_v26, %v119_v25 }
 0x126   :  { %126 = vst [vmem:[#allocation2] sm:$0xff] %v125_v27 }
 0x127   :  { %166 = shalt.err (!%p163_p4)
}
 0x128   :  { %136 = dma.vmem_to_hbm [thread:$0]  %s134_s16, 128, %s224_s2, [#allocation3]  }
 0x129   :  { %175 = dma.done.wait [#allocation3], 128  }
 0x12a   :  { %176 = vsyncadd [#allocation3], 4294967168 }
 0x12b   :  { %140 = vsyncpa [#allocation3], 1 }

</bundles_post_ra>
